<compile_context>
chip_gen: v7x
topology: tpu7x:2x2x1
jax: 0.10.0
libtpu: 0.0.40
codegen_flags: <defaults>
</compile_context>

<pallas_src>
import functools

import jax
import jax.numpy as jnp
from jax import lax
from jax.experimental import pallas as pl
from jax.experimental.pallas import tpu as pltpu


def _round_up(a, m):
    return (a + m - 1) // m * m


def _ffn_conv_kernel(x_prev_ref, x_cur_ref, x_next_ref,
                     gamma_ref, beta_ref, w1s_ref, b1_ref, w2k_ref, b2_ref,
                     out_ref, *, eps, tile_t, seq_len, matmul_dtype):
    TT = tile_t
    t0 = pl.program_id(1) * TT                       # first global row of tile

    # Extended input: [8-row left halo | TILE_T rows | 8-row right halo].
    # Row i of x_ext corresponds to global time index (t0 - 8 + i).
    x_ext = jnp.concatenate(
        [x_prev_ref[0], x_cur_ref[0], x_next_ref[0]], axis=0
    ).astype(jnp.float32)                            # (TT+16, D)

    # LayerNorm over features (biased variance, affine), in f32.
    mean = jnp.mean(x_ext, axis=-1, keepdims=True)
    var = jnp.mean(jnp.square(x_ext - mean), axis=-1, keepdims=True)
    xn = (x_ext - mean) * lax.rsqrt(var + eps)
    xn = xn * gamma_ref[...] + beta_ref[...]

    # Zero every row outside the true sequence [0, T): this makes the halo
    # behave exactly like Conv1d's zero padding (and neutralizes T padding).
    row = lax.broadcasted_iota(jnp.int32, xn.shape, 0) + (t0 - 8)
    xn = jnp.where(jnp.logical_and(row >= 0, row < seq_len), xn, 0.0)
    xn = xn.astype(matmul_dtype)

    # ---- Conv1 (k=3, pad=1), taps fused into one K=3D matmul --------------
    # h row j corresponds to global time (t0 - 1 + j), j in [0, TT+2).
    a = jnp.concatenate(
        [xn[6:TT + 8], xn[7:TT + 9], xn[8:TT + 10]], axis=-1)   # (TT+2, 3D)
    h = jnp.dot(a, w1s_ref[...], preferred_element_type=jnp.float32)
    h = h + b1_ref[...]                               # (TT+2, H), f32
    h = h * jax.nn.sigmoid(h)                         # Swish, f32

    # Zero h rows outside [0, T) (conv2's zero padding).
    hrow = lax.broadcasted_iota(jnp.int32, h.shape, 0) + (t0 - 1)
    h = jnp.where(jnp.logical_and(hrow >= 0, hrow < seq_len), h, 0.0)
    h = h.astype(matmul_dtype)

    # ---- Conv2 (k=3, pad=1): 3 wide-K matmuls, shift the SMALL outputs ----
    c0 = jnp.dot(h, w2k_ref[0], preferred_element_type=jnp.float32)
    c1 = jnp.dot(h, w2k_ref[1], preferred_element_type=jnp.float32)
    c2 = jnp.dot(h, w2k_ref[2], preferred_element_type=jnp.float32)
    y = c0[0:TT] + c1[1:TT + 1] + c2[2:TT + 2] + b2_ref[...]    # (TT, D)

    # TODO(synk): dropout layers are identity (inference mode); no RNG applied.
    out_ref[0] = y.astype(out_ref.dtype)


def feed_forward_conv_module(x, gamma, beta, w1, b1, w2, b2, *, eps=1e-5,
                             tile_t=512, matmul_dtype=jnp.bfloat16):
    """x: (B, T, D). w1: (H, D, 3), b1: (H,). w2: (D, H, 3), b2: (D,)."""
    B, T, D = x.shape
    H = w1.shape[0]

    # Time tiling: TILE_T multiple of 8, capped; pad T up to a tile multiple.
    TT = _round_up(min(tile_t, _round_up(T, 8)), 8)
    T_pad = _round_up(T, TT)
    NT = T_pad // TT
    r = TT // 8                 # time-tile size in 8-row halo blocks
    nt8 = T_pad // 8            # number of 8-row blocks along time

    x_p = x if T_pad == T else jnp.pad(x, ((0, 0), (0, T_pad - T), (0, 0)))

    # Conv1d weights (Cout, Cin, K):
    #   conv1 -> stacked (3*Cin, Cout) for the fused K=3D matmul,
    #   conv2 -> per-tap (K, Cin, Cout).
    w1s = jnp.transpose(w1, (2, 1, 0)).reshape(3 * D, H).astype(matmul_dtype)
    w2k = jnp.transpose(w2, (2, 1, 0)).astype(matmul_dtype)     # (3, H, D)
    gamma2 = gamma.reshape(1, D).astype(jnp.float32)
    beta2 = beta.reshape(1, D).astype(jnp.float32)
    b1_2 = b1.reshape(1, H).astype(jnp.float32)
    b2_2 = b2.reshape(1, D).astype(jnp.float32)

    kernel = functools.partial(_ffn_conv_kernel, eps=eps, tile_t=TT,
                               seq_len=T, matmul_dtype=matmul_dtype)

    cost = pl.CostEstimate(
        flops=int(12 * B * T_pad * D * H),
        transcendentals=int(B * T_pad * H),
        bytes_accessed=int(2 * B * T_pad * D * x.dtype.itemsize + 12 * D * H),
    )

    out = pl.pallas_call(
        kernel,
        out_shape=jax.ShapeDtypeStruct((B, T_pad, D), x.dtype),
        grid_spec=pltpu.PrefetchScalarGridSpec(
            num_scalar_prefetch=0,
            grid=(B, NT),
            in_specs=[
                # left halo: last 8 rows of the previous tile (clamped).
                pl.BlockSpec((1, 8, D),
                             lambda b, t: (b, jnp.maximum(t * r - 1, 0), 0)),
                # current tile.
                pl.BlockSpec((1, TT, D), lambda b, t: (b, t, 0)),
                # right halo: first 8 rows of the next tile (clamped).
                pl.BlockSpec((1, 8, D),
                             lambda b, t: (b, jnp.minimum((t + 1) * r, nt8 - 1), 0)),
                pl.BlockSpec((1, D), lambda b, t: (0, 0)),        # gamma
                pl.BlockSpec((1, D), lambda b, t: (0, 0)),        # beta
                pl.BlockSpec((3 * D, H), lambda b, t: (0, 0)),    # conv1 W (stacked)
                pl.BlockSpec((1, H), lambda b, t: (0, 0)),        # conv1 bias
                pl.BlockSpec((3, H, D), lambda b, t: (0, 0, 0)),  # conv2 W (per tap)
                pl.BlockSpec((1, D), lambda b, t: (0, 0)),        # conv2 bias
            ],
            out_specs=pl.BlockSpec((1, TT, D), lambda b, t: (b, t, 0)),
        ),
        compiler_params=pltpu.CompilerParams(
            dimension_semantics=("parallel", "parallel"),
            vmem_limit_bytes=64 * 1024 * 1024),
        cost_estimate=cost,
    )(x_p, x_p, x_p, gamma2, beta2, w1s, b1_2, w2k, b2_2)

    return out if T_pad == T else out[:, :T, :]


# ----------------------------- references ---------------------------------

def _conv1d_k3(x_nct, w, b, matmul_dtype):
    dn = ("NCH", "OIH", "NCH")
    if matmul_dtype is not None:
        x_nct = x_nct.astype(matmul_dtype)
        w = w.astype(matmul_dtype)
    y = lax.conv_general_dilated(x_nct, w, (1,), [(1, 1)],
                                 dimension_numbers=dn,
                                 preferred_element_type=jnp.float32)
    return y + b[None, :, None].astype(jnp.float32)


def _reference(x, gamma, beta, w1, b1, w2, b2, eps=1e-5, matmul_dtype=None):
    """Pure-JAX reference mirroring the PyTorch forward (eval mode)."""
    mean = jnp.mean(x, axis=-1, keepdims=True)
    var = jnp.mean((x - mean) ** 2, axis=-1, keepdims=True)
    xn = (x - mean) * lax.rsqrt(var + eps) * gamma + beta
    xt = jnp.transpose(xn, (0, 2, 1))                  # (B, D, T) == NCT
    h = _conv1d_k3(xt, w1, b1, matmul_dtype)
    h = h * jax.nn.sigmoid(h)
    y = _conv1d_k3(h, w2, b2, matmul_dtype)
    return jnp.transpose(y, (0, 2, 1))


def _run_case(key, B, T, D, E, tile_t):
    H = D * E
    k_x, k_g, k_b, k_w1, k_b1, k_w2, k_b2 = jax.random.split(key, 7)
    x = jax.random.normal(k_x, (B, T, D), jnp.float32)
    gamma = 1.0 + 0.1 * jax.random.normal(k_g, (D,), jnp.float32)
    beta = 0.1 * jax.random.normal(k_b, (D,), jnp.float32)
    w1 = 0.1 * jax.random.normal(k_w1, (H, D, 3), jnp.float32)
    b1 = 0.1 * jax.random.normal(k_b1, (H,), jnp.float32)
    w2 = 0.1 * jax.random.normal(k_w2, (D, H, 3), jnp.float32)
    b2 = 0.1 * jax.random.normal(k_b2, (D,), jnp.float32)

    out = feed_forward_conv_module(x, gamma, beta, w1, b1, w2, b2,
                                   tile_t=tile_t)
    out = jax.block_until_ready(out)
    assert out.shape == (B, T, D)

    # Reference with the same bf16 matmul quantization (tight tolerance).
    ref_bf = _reference(x, gamma, beta, w1, b1, w2, b2,
                        matmul_dtype=jnp.bfloat16)
    assert jnp.allclose(out, ref_bf, atol=5e-3, rtol=5e-3), (
        float(jnp.max(jnp.abs(out - ref_bf))))
    # Full-f32 reference (loose tolerance, bf16 MXU inputs).
    ref_f32 = _reference(x, gamma, beta, w1, b1, w2, b2)
    assert jnp.allclose(out, ref_f32, atol=1e-1, rtol=1e-1), (
        float(jnp.max(jnp.abs(out - ref_f32))))


if __name__ == "__main__":
    key = jax.random.PRNGKey(0)
    k1, k2 = jax.random.split(key)
    # Small shape consistent with the module (batch=2, time=8, dim=32, x4).
    _run_case(k1, B=2, T=8, D=32, E=4, tile_t=512)
    # Multi-tile case: T not a tile multiple -> exercises halos, clamped
    # index maps and pad masking (3 time tiles of 16 over T=37).
    _run_case(k2, B=2, T=37, D=128, E=2, tile_t=16)
    print("KERNEL_OK")
</pallas_src>

<mosaic_0001>
module attributes {stable_mosaic.version = 11 : i64} {
  func.func @_ffn_conv_kernel(%arg0: i32, %arg1: i32, %arg2: memref<1x8x32xf32, #tpu.memory_space<vmem>>, %arg3: memref<1x8x32xf32, #tpu.memory_space<vmem>>, %arg4: memref<1x8x32xf32, #tpu.memory_space<vmem>>, %arg5: memref<1x32xf32, #tpu.memory_space<vmem>>, %arg6: memref<1x32xf32, #tpu.memory_space<vmem>>, %arg7: memref<96x128xbf16, #tpu.memory_space<vmem>>, %arg8: memref<1x128xf32, #tpu.memory_space<vmem>>, %arg9: memref<3x128x32xbf16, #tpu.memory_space<vmem>>, %arg10: memref<1x32xf32, #tpu.memory_space<vmem>>, %arg11: memref<1x8x32xf32, #tpu.memory_space<vmem>>) attributes {dimension_semantics = [#tpu.dimension_semantics<parallel>, #tpu.dimension_semantics<parallel>], iteration_bounds = array<i64: 2, 1>, scalar_prefetch = 0 : i64, scratch_operands = 0 : i64, tpu.core_type = #tpu.core_type<tc>, window_params = [{transform_indices = @transform_0, window_bounds = array<i64: 1, 8, 32>}, {transform_indices = @transform_1, window_bounds = array<i64: 1, 8, 32>}, {transform_indices = @transform_2, window_bounds = array<i64: 1, 8, 32>}, {pipeline_mode = #tpu.pipeline_mode<synchronous>, transform_indices = @transform_3, window_bounds = array<i64: 1, 32>}, {pipeline_mode = #tpu.pipeline_mode<synchronous>, transform_indices = @transform_4, window_bounds = array<i64: 1, 32>}, {pipeline_mode = #tpu.pipeline_mode<synchronous>, transform_indices = @transform_5, window_bounds = array<i64: 96, 128>}, {pipeline_mode = #tpu.pipeline_mode<synchronous>, transform_indices = @transform_6, window_bounds = array<i64: 1, 128>}, {pipeline_mode = #tpu.pipeline_mode<synchronous>, transform_indices = @transform_7, window_bounds = array<i64: 3, 128, 32>}, {pipeline_mode = #tpu.pipeline_mode<synchronous>, transform_indices = @transform_8, window_bounds = array<i64: 1, 32>}, {transform_indices = @transform_9, window_bounds = array<i64: 1, 8, 32>}]} {
    %c8_i32 = arith.constant 8 : i32
    %0 = arith.muli %arg1, %c8_i32 : i32
    %c0 = arith.constant 0 : index
    %c0_0 = arith.constant 0 : index
    %c0_1 = arith.constant 0 : index
    %1 = vector.load %arg2[%c0, %c0_0, %c0_1] : memref<1x8x32xf32, #tpu.memory_space<vmem>>, vector<1x8x32xf32>
    %2 = vector.shape_cast %1 : vector<1x8x32xf32> to vector<8x32xf32>
    %c0_2 = arith.constant 0 : index
    %c0_3 = arith.constant 0 : index
    %c0_4 = arith.constant 0 : index
    %3 = vector.load %arg3[%c0_2, %c0_3, %c0_4] : memref<1x8x32xf32, #tpu.memory_space<vmem>>, vector<1x8x32xf32>
    %4 = vector.shape_cast %3 : vector<1x8x32xf32> to vector<8x32xf32>
    %c0_5 = arith.constant 0 : index
    %c0_6 = arith.constant 0 : index
    %c0_7 = arith.constant 0 : index
    %5 = vector.load %arg4[%c0_5, %c0_6, %c0_7] : memref<1x8x32xf32, #tpu.memory_space<vmem>>, vector<1x8x32xf32>
    %6 = vector.shape_cast %5 : vector<1x8x32xf32> to vector<8x32xf32>
    %7 = tpu.concatenate %2, %4, %6 in 0 : vector<8x32xf32>, vector<8x32xf32>, vector<8x32xf32> -> vector<24x32xf32>
    %cst = arith.constant dense<0.000000e+00> : vector<24xf32>
    %8 = vector.multi_reduction <add>, %7, %cst [1] : vector<24x32xf32> to vector<24xf32>
    %9 = vector.shape_cast %8 : vector<24xf32> to vector<24x1xf32>
    %cst_8 = arith.constant 3.200000e+01 : f32
    %10 = vector.broadcast %cst_8 : f32 to vector<24x1xf32>
    %11 = arith.divf %9, %10 : vector<24x1xf32>
    %12 = vector.broadcast %11 : vector<24x1xf32> to vector<24x32xf32>
    %13 = arith.subf %7, %12 : vector<24x32xf32>
    %14 = arith.mulf %13, %13 : vector<24x32xf32>
    %cst_9 = arith.constant dense<0.000000e+00> : vector<24xf32>
    %15 = vector.multi_reduction <add>, %14, %cst_9 [1] : vector<24x32xf32> to vector<24xf32>
    %16 = vector.shape_cast %15 : vector<24xf32> to vector<24x1xf32>
    %cst_10 = arith.constant 3.200000e+01 : f32
    %17 = vector.broadcast %cst_10 : f32 to vector<24x1xf32>
    %18 = arith.divf %16, %17 : vector<24x1xf32>
    %19 = vector.broadcast %11 : vector<24x1xf32> to vector<24x32xf32>
    %20 = arith.subf %7, %19 : vector<24x32xf32>
    %cst_11 = arith.constant 9.99999974E-6 : f32
    %21 = vector.broadcast %cst_11 : f32 to vector<24x1xf32>
    %22 = arith.addf %18, %21 : vector<24x1xf32>
    %23 = math.rsqrt %22 : vector<24x1xf32>
    %24 = vector.broadcast %23 : vector<24x1xf32> to vector<24x32xf32>
    %25 = arith.mulf %20, %24 : vector<24x32xf32>
    %c0_12 = arith.constant 0 : index
    %c0_13 = arith.constant 0 : index
    %26 = vector.load %arg5[%c0_12, %c0_13] : memref<1x32xf32, #tpu.memory_space<vmem>>, vector<1x32xf32>
    %27 = vector.broadcast %26 : vector<1x32xf32> to vector<24x32xf32>
    %28 = arith.mulf %25, %27 : vector<24x32xf32>
    %c0_14 = arith.constant 0 : index
    %c0_15 = arith.constant 0 : index
    %29 = vector.load %arg6[%c0_14, %c0_15] : memref<1x32xf32, #tpu.memory_space<vmem>>, vector<1x32xf32>
    %30 = vector.broadcast %29 : vector<1x32xf32> to vector<24x32xf32>
    %31 = arith.addf %28, %30 : vector<24x32xf32>
    %32 = tpu.iota {dimensions = array<i32: 0>} : vector<24x32xi32>
    %c8_i32_16 = arith.constant 8 : i32
    %33 = arith.subi %0, %c8_i32_16 : i32
    %34 = vector.broadcast %33 : i32 to vector<24x32xi32>
    %35 = arith.addi %32, %34 : vector<24x32xi32>
    %c0_i32 = arith.constant 0 : i32
    %36 = vector.broadcast %c0_i32 : i32 to vector<24x32xi32>
    %37 = arith.cmpi sge, %35, %36 : vector<24x32xi32>
    %c8_i32_17 = arith.constant 8 : i32
    %38 = vector.broadcast %c8_i32_17 : i32 to vector<24x32xi32>
    %39 = arith.cmpi slt, %35, %38 : vector<24x32xi32>
    %40 = arith.andi %37, %39 : vector<24x32xi1>
    %cst_18 = arith.constant 0.000000e+00 : f32
    %41 = vector.broadcast %cst_18 : f32 to vector<24x32xf32>
    %42 = arith.select %40, %31, %41 : vector<24x32xi1>, vector<24x32xf32>
    %43 = arith.truncf %42 : vector<24x32xf32> to vector<24x32xbf16>
    %44 = vector.extract_strided_slice %43 {offsets = [6, 0], sizes = [10, 32], strides = [1, 1]} : vector<24x32xbf16> to vector<10x32xbf16>
    %45 = vector.extract_strided_slice %43 {offsets = [7, 0], sizes = [10, 32], strides = [1, 1]} : vector<24x32xbf16> to vector<10x32xbf16>
    %46 = vector.extract_strided_slice %43 {offsets = [8, 0], sizes = [10, 32], strides = [1, 1]} : vector<24x32xbf16> to vector<10x32xbf16>
    %47 = tpu.concatenate %44, %45, %46 in 1 : vector<10x32xbf16>, vector<10x32xbf16>, vector<10x32xbf16> -> vector<10x96xbf16>
    %c0_19 = arith.constant 0 : index
    %c0_20 = arith.constant 0 : index
    %48 = vector.load %arg7[%c0_19, %c0_20] : memref<96x128xbf16, #tpu.memory_space<vmem>>, vector<96x128xbf16>
    %cst_21 = arith.constant dense<0.000000e+00> : vector<10x128xf32>
    %49 = tpu.matmul %47, %48, %cst_21 {dimension_numbers = #tpu.dot_dimension_numbers<[1], [0], [0], [1], [0, 0, 1, 1], [], []>} : vector<10x96xbf16>, vector<96x128xbf16>, vector<10x128xf32> -> vector<10x128xf32>
    %c0_22 = arith.constant 0 : index
    %c0_23 = arith.constant 0 : index
    %50 = vector.load %arg8[%c0_22, %c0_23] : memref<1x128xf32, #tpu.memory_space<vmem>>, vector<1x128xf32>
    %51 = vector.broadcast %50 : vector<1x128xf32> to vector<10x128xf32>
    %52 = arith.addf %49, %51 : vector<10x128xf32>
    %53 = arith.negf %52 : vector<10x128xf32>
    %54 = math.exp %53 : vector<10x128xf32>
    %cst_24 = arith.constant 1.000000e+00 : f32
    %55 = vector.broadcast %cst_24 : f32 to vector<10x128xf32>
    %56 = arith.addf %55, %54 : vector<10x128xf32>
    %57 = arith.divf %55, %56 : vector<10x128xf32>
    %58 = arith.mulf %52, %57 : vector<10x128xf32>
    %59 = tpu.iota {dimensions = array<i32: 0>} : vector<10x128xi32>
    %c1_i32 = arith.constant 1 : i32
    %60 = arith.subi %0, %c1_i32 : i32
    %61 = vector.broadcast %60 : i32 to vector<10x128xi32>
    %62 = arith.addi %59, %61 : vector<10x128xi32>
    %c0_i32_25 = arith.constant 0 : i32
    %63 = vector.broadcast %c0_i32_25 : i32 to vector<10x128xi32>
    %64 = arith.cmpi sge, %62, %63 : vector<10x128xi32>
    %c8_i32_26 = arith.constant 8 : i32
    %65 = vector.broadcast %c8_i32_26 : i32 to vector<10x128xi32>
    %66 = arith.cmpi slt, %62, %65 : vector<10x128xi32>
    %67 = arith.andi %64, %66 : vector<10x128xi1>
    %cst_27 = arith.constant 0.000000e+00 : f32
    %68 = vector.broadcast %cst_27 : f32 to vector<10x128xf32>
    %69 = arith.select %67, %58, %68 : vector<10x128xi1>, vector<10x128xf32>
    %70 = arith.truncf %69 : vector<10x128xf32> to vector<10x128xbf16>
    %c0_28 = arith.constant 0 : index
    %c0_29 = arith.constant 0 : index
    %c0_30 = arith.constant 0 : index
    %71 = vector.load %arg9[%c0_28, %c0_29, %c0_30] : memref<3x128x32xbf16, #tpu.memory_space<vmem>>, vector<1x128x32xbf16>
    %72 = vector.shape_cast %71 : vector<1x128x32xbf16> to vector<128x32xbf16>
    %cst_31 = arith.constant dense<0.000000e+00> : vector<10x32xf32>
    %73 = tpu.matmul %70, %72, %cst_31 {dimension_numbers = #tpu.dot_dimension_numbers<[1], [0], [0], [1], [0, 0, 1, 1], [], []>} : vector<10x128xbf16>, vector<128x32xbf16>, vector<10x32xf32> -> vector<10x32xf32>
    %c1 = arith.constant 1 : index
    %c0_32 = arith.constant 0 : index
    %c0_33 = arith.constant 0 : index
    %74 = vector.load %arg9[%c1, %c0_32, %c0_33] : memref<3x128x32xbf16, #tpu.memory_space<vmem>>, vector<1x128x32xbf16>
    %75 = vector.shape_cast %74 : vector<1x128x32xbf16> to vector<128x32xbf16>
    %cst_34 = arith.constant dense<0.000000e+00> : vector<10x32xf32>
    %76 = tpu.matmul %70, %75, %cst_34 {dimension_numbers = #tpu.dot_dimension_numbers<[1], [0], [0], [1], [0, 0, 1, 1], [], []>} : vector<10x128xbf16>, vector<128x32xbf16>, vector<10x32xf32> -> vector<10x32xf32>
    %c2 = arith.constant 2 : index
    %c0_35 = arith.constant 0 : index
    %c0_36 = arith.constant 0 : index
    %77 = vector.load %arg9[%c2, %c0_35, %c0_36] : memref<3x128x32xbf16, #tpu.memory_space<vmem>>, vector<1x128x32xbf16>
    %78 = vector.shape_cast %77 : vector<1x128x32xbf16> to vector<128x32xbf16>
    %cst_37 = arith.constant dense<0.000000e+00> : vector<10x32xf32>
    %79 = tpu.matmul %70, %78, %cst_37 {dimension_numbers = #tpu.dot_dimension_numbers<[1], [0], [0], [1], [0, 0, 1, 1], [], []>} : vector<10x128xbf16>, vector<128x32xbf16>, vector<10x32xf32> -> vector<10x32xf32>
    %80 = vector.extract_strided_slice %73 {offsets = [0, 0], sizes = [8, 32], strides = [1, 1]} : vector<10x32xf32> to vector<8x32xf32>
    %81 = vector.extract_strided_slice %76 {offsets = [1, 0], sizes = [8, 32], strides = [1, 1]} : vector<10x32xf32> to vector<8x32xf32>
    %82 = arith.addf %80, %81 : vector<8x32xf32>
    %83 = vector.extract_strided_slice %79 {offsets = [2, 0], sizes = [8, 32], strides = [1, 1]} : vector<10x32xf32> to vector<8x32xf32>
    %84 = arith.addf %82, %83 : vector<8x32xf32>
    %c0_38 = arith.constant 0 : index
    %c0_39 = arith.constant 0 : index
    %85 = vector.load %arg10[%c0_38, %c0_39] : memref<1x32xf32, #tpu.memory_space<vmem>>, vector<1x32xf32>
    %86 = vector.broadcast %85 : vector<1x32xf32> to vector<8x32xf32>
    %87 = arith.addf %84, %86 : vector<8x32xf32>
    %c0_40 = arith.constant 0 : index
    %c0_41 = arith.constant 0 : index
    %c0_42 = arith.constant 0 : index
    %88 = vector.load %arg11[%c0_40, %c0_41, %c0_42] : memref<1x8x32xf32, #tpu.memory_space<vmem>>, vector<1x8x32xf32>
    %89 = vector.shape_cast %88 : vector<1x8x32xf32> to vector<8x32xf32>
    %90 = vector.shape_cast %87 : vector<8x32xf32> to vector<1x8x32xf32>
    tpu.vector_store %arg11[%c0_40, %c0_41, %c0_42], %90 {strides = array<i32>} : memref<1x8x32xf32, #tpu.memory_space<vmem>>, vector<1x8x32xf32>,
    return
  }
  func.func @transform_0(%arg0: i32, %arg1: i32) -> (i32, i32, i32) {
    %c1_i32 = arith.constant 1 : i32
    %0 = arith.muli %arg1, %c1_i32 : i32
    %c1_i32_0 = arith.constant 1 : i32
    %1 = arith.subi %0, %c1_i32_0 : i32
    %c0_i32 = arith.constant 0 : i32
    %2 = arith.maxsi %1, %c0_i32 : i32
    %c0_i32_1 = arith.constant 0 : i32
    %c0_i32_2 = arith.constant 0 : i32
    return %arg0, %2, %c0_i32_1 : i32, i32, i32
  }
  func.func @transform_1(%arg0: i32, %arg1: i32) -> (i32, i32, i32) {
    %c0_i32 = arith.constant 0 : i32
    %c0_i32_0 = arith.constant 0 : i32
    return %arg0, %arg1, %c0_i32 : i32, i32, i32
  }
  func.func @transform_2(%arg0: i32, %arg1: i32) -> (i32, i32, i32) {
    %c1_i32 = arith.constant 1 : i32
    %0 = arith.addi %arg1, %c1_i32 : i32
    %c1_i32_0 = arith.constant 1 : i32
    %1 = arith.muli %0, %c1_i32_0 : i32
    %c0_i32 = arith.constant 0 : i32
    %2 = arith.minsi %1, %c0_i32 : i32
    %c0_i32_1 = arith.constant 0 : i32
    %c0_i32_2 = arith.constant 0 : i32
    return %arg0, %2, %c0_i32_1 : i32, i32, i32
  }
  func.func @transform_3(%arg0: i32, %arg1: i32) -> (i32, i32) {
    %c0_i32 = arith.constant 0 : i32
    %c0_i32_0 = arith.constant 0 : i32
    %c0_i32_1 = arith.constant 0 : i32
    return %c0_i32, %c0_i32_0 : i32, i32
  }
  func.func @transform_4(%arg0: i32, %arg1: i32) -> (i32, i32) {
    %c0_i32 = arith.constant 0 : i32
    %c0_i32_0 = arith.constant 0 : i32
    %c0_i32_1 = arith.constant 0 : i32
    return %c0_i32, %c0_i32_0 : i32, i32
  }
  func.func @transform_5(%arg0: i32, %arg1: i32) -> (i32, i32) {
    %c0_i32 = arith.constant 0 : i32
    %c0_i32_0 = arith.constant 0 : i32
    %c0_i32_1 = arith.constant 0 : i32
    return %c0_i32, %c0_i32_0 : i32, i32
  }
  func.func @transform_6(%arg0: i32, %arg1: i32) -> (i32, i32) {
    %c0_i32 = arith.constant 0 : i32
    %c0_i32_0 = arith.constant 0 : i32
    %c0_i32_1 = arith.constant 0 : i32
    return %c0_i32, %c0_i32_0 : i32, i32
  }
  func.func @transform_7(%arg0: i32, %arg1: i32) -> (i32, i32, i32) {
    %c0_i32 = arith.constant 0 : i32
    %c0_i32_0 = arith.constant 0 : i32
    %c0_i32_1 = arith.constant 0 : i32
    %c0_i32_2 = arith.constant 0 : i32
    return %c0_i32, %c0_i32_0, %c0_i32_1 : i32, i32, i32
  }
  func.func @transform_8(%arg0: i32, %arg1: i32) -> (i32, i32) {
    %c0_i32 = arith.constant 0 : i32
    %c0_i32_0 = arith.constant 0 : i32
    %c0_i32_1 = arith.constant 0 : i32
    return %c0_i32, %c0_i32_0 : i32, i32
  }
  func.func @transform_9(%arg0: i32, %arg1: i32) -> (i32, i32, i32) {
    %c0_i32 = arith.constant 0 : i32
    %c0_i32_0 = arith.constant 0 : i32
    return %arg0, %arg1, %c0_i32 : i32, i32, i32
  }
}

</mosaic_0001>

<bundles_post_ra>
// kernel: tpu_custom_call.1
= control target key start
LH: loop header
LB: loop body
LE: loop exit
PB: predicated region body
PF: predicated region fallthrough
CT: control target
= control target key end

     0   :  { %s2585_s0 = inlined_call_operand.hbm [shape: f32[2,8,32], index: 0, kind: input, shape index: {}]   ;;  %s2586_s1 = inlined_call_operand.hbm [shape: f32[2,8,32], index: 1, kind: input, shape index: {}]   ;;  %s2587_s2 = inlined_call_operand.hbm [shape: f32[2,8,32], index: 2, kind: input, shape index: {}]   ;;  %s2588_s3 = inlined_call_operand.hbm [shape: f32[1,32], index: 3, kind: input, shape index: {}]   ;;  %s2589_s4 = inlined_call_operand.hbm [shape: f32[1,32], index: 4, kind: input, shape index: {}]   ;;  %s2590_s5 = inlined_call_operand.hbm [shape: bf16[96,128], index: 5, kind: input, shape index: {}]   ;;  %s2591_s6 = inlined_call_operand.hbm [shape: f32[1,128], index: 6, kind: input, shape index: {}]   ;;  %s2592_s7 = inlined_call_operand.hbm [shape: bf16[3,128,32], index: 7, kind: input, shape index: {}]   ;;  %s2593_s8 = inlined_call_operand.hbm [shape: f32[1,32], index: 8, kind: input, shape index: {}]   ;;  %s2594_s9 = inlined_call_operand.hbm [shape: f32[2,8,32], index: 9, kind: output, shape index: {}]  }
   0x1   :  { %2617 = sst [smem:[#allocation31_spill]] %s2586_s1 }
   0x2   :  { %2618 = sst [smem:[#allocation32_spill]] %s2588_s3 }
   0x3   :  { %2619 = sst [smem:[#allocation33_spill]] %s2590_s5 }
   0x4   :  { %2620 = sst [smem:[#allocation34_spill]] %s2592_s7 }
   0x5   :  { %2621 = sst [smem:[#allocation35_spill]] %s2594_s9 }
   0x6   :  { %14 = vsyncpa [#allocation3], 0 }
   0x7   :  { %16 = vsyncpa [#allocation3 + $0x1], 0 }
   0x8   :  { %17 = vsyncpa [#allocation6], 0 }
   0x9   :  { %19 = vsyncpa [#allocation6 + $0x1], 0 }
   0xa   :  { %20 = vsyncpa [#allocation9], 0 }
   0xb   :  { %21 = vsyncpa [#allocation12], 0 }
   0xc   :  { %22 = vsyncpa [#allocation15], 0 }
   0xd   :  { %23 = vsyncpa [#allocation4], 0 }
   0xe   :  { %25 = vsyncpa [#allocation4 + $0x1], 0  ;;  %s2123_s30 = smov 0   ;;  %s2125_s10 = smov 0  }
   0xf   :  { %s2127_s11 = smov 0   ;;  %s2129_s12 = smov 0  }
  0x10   :  { %s2131_s13 = smov 0   ;;  %s2133_s14 = smov 0  }
  0x11 LB: > { %2622 = sst [smem:[#allocation24_spill]] %s2033_s30  ;;  %s2154_s15 = sadd.s32 4294967295, %s2053_s14   ;;  %s2053_s14 = sphi %s2133_s14, %s31_s14   ;;  %s2049_s13 = sphi %s2131_s13, %s2669_s13   ;;  %s2045_s12 = sphi %s2129_s12, %s2668_s12   ;;  %s2041_s11 = sphi %s2127_s11, %s2672_s11   ;;  %s2037_s10 = sphi %s2125_s10, %s2671_s10   ;;  %s2033_s30 = sphi %s2123_s30, %s2670_s30  }
  0x12   : > { %2623 = sst [smem:[#allocation25_spill]] %s2049_s13  ;;  %p1331_p0 = scmp.ge.s32.totalorder %s2053_s14, 1 }
  0x13   : > { %2624 = sst [smem:[#allocation26_spill]] %s2053_s14  ;;  %p2595_p1 = scmp.eq.s32.totalorder %s2154_s15, 0 }
  0x14   : > { %p298_p2 = scmp.lt.s32.totalorder %s2053_s14, 3  ;;  %s2055_s17 = smov [#allocation8]  }
  0x15   : > { %s311_s18 = sshll.u32 %s2055_s17, 4  ;;  %s2056_s19 = smov [#allocation11]   ;;  %s312_s18 = int_to_ptr.vmem [resolvable:$true] %s311_s18 }
  0x16   : > { %p2159_p3 = pnand %p1331_p0, %p298_p2  ;;  %s332_s20 = sshll.u32 %s2056_s19, 4  ;;  %s2172_s20 = int_to_ptr.vmem [resolvable:$true] %s332_s20 }
  0x17   : > { %s2057_s22 = smov [#allocation14]   ;;  %s2627_s3 = sld [smem:[#allocation32_spill]] }
  0x18   : > { %s2625_s16 = scalar_select %p2159_p3, 1, 0 }
  0x19   : > { %p1548_p5 = pneg %p2159_p3  ;;  %s2174_s23 = sshll.u32 %s2057_s22, 4  ;;  %s357_s23 = int_to_ptr.vmem [resolvable:$true] %s2174_s23 }
  0x1b   : > { %p2168_p6 = pnand %p1548_p5, %p2595_p1 }
  0x1d   : > { %s2626_s21 = scalar_select %p2168_p6, 1, 0 }
  0x1e   : > { %s1697_s26 = scalar_lea.hbm %s2627_s3, 16  ;;  %p2184_p8 = pneg %p2168_p6 }
  0x1f   : > { %p1698_p7 = scmp.ne.s32.totalorder %s2627_s3, %s1697_s26  ;;  %p1704_p11 = scmp.lt.u32.totalorder %s1697_s26, %s2627_s3 }
  0x20   : > { %s2628_s29 = scalar_select %p2184_p8, 1, 0 }
  0x21   : > { %p1700_p9 = pnand %p2184_p8, %p1698_p7 }
  0x23   : > { %p1701_p10 = pneg %p1700_p9 }
  0x25   : > { %p1706_p12 = pnand %p1704_p11, %p1701_p10 }
  0x27   : > { %1709 = shalt.err (!%p1706_p12)
}
  0x28   : > { %s1710_s22 = scalar_lea.vmem %s312_s18, 16  ;;  %s1717_s24 = scalar_lea.vmem %s312_s18, 32 }
  0x29   : > { %p1711_p13 = scmp.ne.s32.totalorder %s312_s18, %s1710_s22  ;;  %p1718_p5 = scmp.lt.s32.totalorder %s312_s18, %s312_s18 }
  0x2a   : > { %p1719_p4 = scmp.lt.s32.totalorder %s1717_s24, %s1710_s22 }
  0x2b   : > { %p1713_p0 = pnand %p1711_p13, %p2184_p8 }
  0x2c   : > { %p1720_p1 = por %p1719_p4, %p1718_p5 }
  0x2d   : > { %p1714_p2 = pneg %p1713_p0 }
  0x2f   : > { %p1721_p3 = pnand %p1720_p1, %p1714_p2 }
  0x31   : > { %1724 = shalt.err (!%p1721_p3)
}
  0x32   : > { %1551 = dma.hbm_to_vmem [thread:$0]  (!%p2168_p6), %s2627_s3, 16, %s312_s18, [#allocation9]  }
  0x33   : > { %s2629_s5 = sld [smem:[#allocation33_spill]] }
  0x39   : > { %s1725_s17 = scalar_lea.hbm %s2629_s5, 768 }
  0x3a   : > { %p1726_p7 = scmp.ne.s32.totalorder %s2629_s5, %s1725_s17  ;;  %p1732_p1 = scmp.lt.u32.totalorder %s1725_s17, %s2629_s5 }
  0x3c   : > { %p1728_p9 = pnand %p1726_p7, %p2184_p8 }
  0x3e   : > { %p1729_p4 = pneg %p1728_p9 }
  0x40   : > { %p1734_p3 = pnand %p1732_p1, %p1729_p4 }
  0x42   : > { %1737 = shalt.err (!%p1734_p3)
}
  0x43   : > { %s1738_s18 = scalar_lea.vmem %s2172_s20, 768  ;;  %p1746_p13 = scmp.lt.s32.totalorder %s2172_s20, %s2172_s20 }
  0x44   : > { %p1739_p10 = scmp.ne.s32.totalorder %s2172_s20, %s1738_s18  ;;  %p1747_p0 = scmp.lt.s32.totalorder %s1738_s18, %s1738_s18 }
  0x46   : > { %p1741_p11 = pnand %p1739_p10, %p2184_p8  ;;  %p1748_p2 = por %p1747_p0, %p1746_p13 }
  0x48   : > { %p1742_p12 = pneg %p1741_p11 }
  0x4a   : > { %p1749_p5 = pnand %p1748_p2, %p1742_p12 }
  0x4c   : > { %1752 = shalt.err (!%p1749_p5)
}
  0x4d   : > { %s2058_s9 = smov 64   ;;  %s2059_s25 = smov 4  }
  0x4e   : > { %1557 = dma.hbm_to_vmem [thread:$0]  (!%p2168_p6), %s2629_s5, 768, %s2172_s20, [#allocation12], %s2058_s9, %s2058_s9, %s2059_s25  }
  0x4f   : > { %s2630_s7 = sld [smem:[#allocation34_spill]] }
  0x55   : > { %s1753_s19 = scalar_lea.hbm %s2630_s7, 3072 }
  0x56   : > { %p1754_p7 = scmp.ne.s32.totalorder %s2630_s7, %s1753_s19  ;;  %p1760_p1 = scmp.lt.u32.totalorder %s1753_s19, %s2630_s7 }
  0x58   : > { %p1756_p9 = pnand %p1754_p7, %p2184_p8 }
  0x5a   : > { %p1757_p4 = pneg %p1756_p9 }
  0x5c   : > { %p1762_p3 = pnand %p1760_p1, %p1757_p4 }
  0x5e   : > { %1765 = shalt.err (!%p1762_p3)
}
  0x5f   : > { %s1766_s27 = scalar_lea.vmem %s357_s23, 3072  ;;  %p1774_p13 = scmp.lt.s32.totalorder %s357_s23, %s357_s23 }
  0x60   : > { %p1767_p10 = scmp.ne.s32.totalorder %s357_s23, %s1766_s27  ;;  %p1775_p0 = scmp.lt.s32.totalorder %s1766_s27, %s1766_s27 }
  0x62   : > { %p1769_p11 = pnand %p1767_p10, %p2184_p8  ;;  %p1776_p2 = por %p1775_p0, %p1774_p13 }
  0x64   : > { %p1770_p12 = pneg %p1769_p11 }
  0x66   : > { %p1777_p5 = pnand %p1776_p2, %p1770_p12 }
  0x68   : > { %1780 = shalt.err (!%p1777_p5)
}
  0x69   : > { %1563 = dma.hbm_to_vmem [thread:$0]  (!%p2168_p6), %s2630_s7, 3072, %s357_s23, [#allocation15], %s2058_s9, %s2058_s9, %s2059_s25  }
  0x6a   : > { %s1330_s3 = sadd.s32 4294967294, %s2053_s14   ;;  %s43_s28 = sadd.s32 1, %s2049_s13 }
  0x6b   : > { %s58_s17 = sadd.s32 1, %s2041_s11  ;;  %p45_p7 = scmp.ge.s32.totalorder %s43_s28, 2 }
  0x6c   : > { %p65_p9 = scmp.ne.s32.totalorder %s2041_s11, %s2037_s10  ;;  %p66_p4 = scmp.eq.s32.totalorder %s2053_s14, 0 }
  0x6d   : > { %p71_p1 = scmp.ne.s32.totalorder %s2037_s10, %s2033_s30  ;;  %s2674_s28 = smov (%p45_p7, %s43_s28), 0 }
  0x6e   : > { %2631 = sst [smem:[#allocation27_spill]] %s2674_s28  ;;  %p2252_p3 = por %p66_p4, %p65_p9 }
  0x6f   : > { %p2633_p10 = scmp.eq.s32.totalorder %s2154_s15, 0  ;;  %s53_s9 = ssub.s32 %s2049_s13, %s2674_s28 }
  0x70   : > { %p285_p12 = scmp.eq.s32.totalorder %s2154_s15, 1  ;;  %p56_p13 = scmp.eq.s32.totalorder %s53_s9, 0 }
  0x71   : > { %p2258_p11 = por %p2633_p10, %p71_p1  ;;  %p291_p0 = scmp.eq.s32.totalorder %s1330_s3, 1 }
  0x72   : > { %p2265_p2 = por %p285_p12, %p65_p9  ;;  %p1587_p5 = scmp.lt.s32.totalorder %s2053_s14, 2 }
  0x73   : > { %s2634_s23 = scalar_select %p2258_p11, 1, 0 }
  0x74   : > { %s2635_s25 = scalar_select %p2265_p2, 1, 0 }
  0x75   : > { %s2271_s22 = scalar_select %p56_p13, %s2041_s11, %s58_s17  }
  0x76   : > { %2636 = sst [smem:[#allocation28_spill]] %s2635_s25  ;;  %p2273_p7 = por %p291_p0, %p71_p1 }
  0x77   : > { %2637 = sst [smem:[#allocation29_spill]] %s2271_s22  ;;  %s2598_s18 = sand.u32 1, %s2041_s11  }
  0x78   : > { %s2638_s24 = scalar_select %p2273_p7, 1, 0 }
  0x79   : > { %s2280_s27 = sshll.u32 %s2598_s18, 3  ;;  %s2283_s20 = sshll.u32 %s2049_s13, 7 }
  0x7a   : > { %2639 = sst [smem:[#allocation30_spill]] %s2638_s24  ;;  %p2287_p9 = pnand %p1587_p5, %p2252_p3 }
  0x7b   : > { %s403_s3 = sand.u32 1, %s2053_s14   ;;  %s2641_s1 = sld [smem:[#allocation31_spill]] }
  0x7c   : > { %s2640_s26 = scalar_select %p2287_p9, 1, 0 }
  0x7d   : > { %s407_s18 = scalar_lea.vmem [#allocation5], %s2280_s27  ;;  %s2060_s19 = smov [#allocation10]  }
  0x7e   : > { %s415_s7 = sshll.u32 %s407_s18, 4  ;;  %s2301_s28 = sshll.u32 %s2060_s19, 4  ;;  %s2299_s7 = int_to_ptr.vmem [resolvable:$true] %s415_s7  ;;  %s323_s28 = int_to_ptr.vmem [resolvable:$true] %s2301_s28 }
  0x7f   : > { %s2303_s13 = scalar_lea.sflag [#allocation6], %s403_s3  ;;  %p2309_p1 = pneg %p2287_p9 }
  0x81   : > { %s2296_s5 = scalar_lea.hbm %s2641_s1, %s2283_s20  ;;  %s1786_s14 = scalar_lea.hbm %s2641_s1, 256 }
  0x82   : > { %s1781_s22 = scalar_lea.hbm %s2296_s5, 128  ;;  %p1787_p12 = scmp.lt.u32.totalorder %s2296_s5, %s2641_s1 }
  0x83   : > { %p1782_p4 = scmp.ne.s32.totalorder %s2296_s5, %s1781_s22  ;;  %p1788_p13 = scmp.lt.u32.totalorder %s1786_s14, %s1781_s22 }
  0x84   : > { %s2642_s17 = scalar_select %p2309_p1, 1, 0 }
  0x85   : > { %p1784_p3 = pnand %p2309_p1, %p1782_p4  ;;  %p1789_p0 = por %p1788_p13, %p1787_p12 }
  0x86   : > { %p1790_p5 = scmp.lt.u32.totalorder %s1781_s22, %s2296_s5 }
  0x87   : > { %p1785_p10 = pneg %p1784_p3 }
  0x88   : > { %p1791_p7 = por %p1790_p5, %p1789_p0 }
  0x8a   : > { %p1792_p2 = pnand %p1791_p7, %p1785_p10 }
  0x8c   : > { %1795 = shalt.err (!%p1792_p2)
}
  0x8d   : > { %s1796_s3 = scalar_lea.vmem %s2299_s7, 128  ;;  %s2061_s9 = smov [#allocation5]  }
  0x8e   : > { %p1797_p4 = scmp.ne.s32.totalorder %s2299_s7, %s1796_s3  ;;  %s1801_s18 = sshll.u32 %s2061_s9, 4  ;;  %s1802_s18 = int_to_ptr.vmem [resolvable:$false] %s1801_s18 }
  0x8f   : > { %s1803_s24 = scalar_lea.vmem %s1802_s18, 256  ;;  %p1804_p6 = scmp.lt.s32.totalorder %s2299_s7, %s1802_s18 }
  0x90   : > { %p1799_p3 = pnand %p1797_p4, %p2309_p1  ;;  %p1805_p8 = scmp.lt.s32.totalorder %s1803_s24, %s1796_s3 }
  0x92   : > { %p1800_p11 = pneg %p1799_p3  ;;  %p1806_p12 = por %p1805_p8, %p1804_p6 }
  0x94   : > { %p1807_p13 = pnand %p1806_p12, %p1800_p11 }
  0x96   : > { %1810 = shalt.err (!%p1807_p13)
}
  0x97   : > { %1573 = dma.hbm_to_vmem [thread:$0]  (!%p2287_p9), %s2296_s5, 128, %s2299_s7, %s2303_s13  }
  0x98   : > { %s1811_s19 = scalar_lea.hbm %s2589_s4, 16  ;;  %p2643_p6 = scmp.ne.s32.totalorder %s2628_s29, 0 }
  0x99   : > { %p1812_p2 = scmp.ne.s32.totalorder %s2589_s4, %s1811_s19  ;;  %p1818_p7 = scmp.lt.u32.totalorder %s1811_s19, %s2589_s4 }
  0x9b   : > { %p1814_p8 = pnand %p1812_p2, %p2643_p6 }
  0x9d   : > { %p1815_p11 = pneg %p1814_p8 }
  0x9f   : > { %p1820_p10 = pnand %p1818_p7, %p1815_p11 }
  0xa1   : > { %1823 = shalt.err (!%p1820_p10)
}
  0xa2   : > { %s1824_s24 = scalar_lea.vmem %s323_s28, 16  ;;  %s1831_s5 = scalar_lea.vmem %s323_s28, 32 }
  0xa3   : > { %p1825_p0 = scmp.ne.s32.totalorder %s323_s28, %s1824_s24  ;;  %p1832_p3 = scmp.lt.s32.totalorder %s323_s28, %s323_s28 }
  0xa4   : > { %p1833_p12 = scmp.lt.s32.totalorder %s1831_s5, %s1824_s24 }
  0xa5   : > { %p1827_p5 = pnand %p1825_p0, %p2643_p6 }
  0xa6   : > { %p1834_p13 = por %p1833_p12, %p1832_p3 }
  0xa7   : > { %p1828_p4 = pneg %p1827_p5 }
  0xa9   : > { %p1835_p9 = pnand %p1834_p13, %p1828_p4 }
  0xab   : > { %1838 = shalt.err (!%p1835_p9)
}
  0xac   : > { %p2644_p2 = scmp.ne.s32.totalorder %s2626_s21, 0  ;;  %s2062_s14 = smov [#allocation13]  }
  0xad   : > { %s346_s22 = sshll.u32 %s2062_s14, 4  ;;  %s2063_s19 = smov [#allocation16]   ;;  %s347_s22 = int_to_ptr.vmem [resolvable:$true] %s346_s22 }
  0xae   : > { %1554 = dma.hbm_to_vmem [thread:$0]  (!%p2644_p2), %s2589_s4, 16, %s323_s28, [#allocation9]  }
  0xaf   : > { %s370_s9 = sshll.u32 %s2063_s19, 4  ;;  %s1839_s30 = scalar_lea.hbm %s2591_s6, 16  ;;  %s371_s9 = int_to_ptr.vmem [resolvable:$true] %s370_s9 }
  0xb0   : > { %p1840_p9 = scmp.ne.s32.totalorder %s2591_s6, %s1839_s30  ;;  %p1846_p7 = scmp.lt.u32.totalorder %s1839_s30, %s2591_s6 }
  0xb2   : > { %p1842_p8 = pnand %p1840_p9, %p2643_p6 }
  0xb4   : > { %p1843_p11 = pneg %p1842_p8 }
  0xb6   : > { %p1848_p10 = pnand %p1846_p7, %p1843_p11 }
  0xb8   : > { %1851 = shalt.err (!%p1848_p10)
}
  0xb9   : > { %s1852_s28 = scalar_lea.vmem %s347_s22, 16  ;;  %s1859_s7 = scalar_lea.vmem %s347_s22, 32 }
  0xba   : > { %p1853_p0 = scmp.ne.s32.totalorder %s347_s22, %s1852_s28  ;;  %p1860_p3 = scmp.lt.s32.totalorder %s347_s22, %s347_s22 }
  0xbb   : > { %p1861_p12 = scmp.lt.s32.totalorder %s1859_s7, %s1852_s28 }
  0xbc   : > { %p1855_p5 = pnand %p1853_p0, %p2643_p6 }
  0xbd   : > { %p1862_p13 = por %p1861_p12, %p1860_p3 }
  0xbe   : > { %p1856_p4 = pneg %p1855_p5 }
  0xc0   : > { %p1863_p1 = pnand %p1862_p13, %p1856_p4 }
  0xc2   : > { %1866 = shalt.err (!%p1863_p1)
}
  0xc3   : > { %1560 = dma.hbm_to_vmem [thread:$0]  (!%p2644_p2), %s2591_s6, 16, %s347_s22, [#allocation12]  }
  0xc4   : > { %s1867_s3 = scalar_lea.hbm %s2593_s8, 16 }
  0xc5   : > { %p1868_p9 = scmp.ne.s32.totalorder %s2593_s8, %s1867_s3  ;;  %p1874_p1 = scmp.lt.u32.totalorder %s1867_s3, %s2593_s8 }
  0xc7   : > { %p1870_p8 = pnand %p1868_p9, %p2643_p6 }
  0xc9   : > { %p1871_p11 = pneg %p1870_p8 }
  0xcb   : > { %p1876_p7 = pnand %p1874_p1, %p1871_p11 }
  0xcd   : > { %1879 = shalt.err (!%p1876_p7)
}
  0xce   : > { %s1880_s28 = scalar_lea.vmem %s371_s9, 16  ;;  %s1887_s22 = scalar_lea.vmem %s371_s9, 32 }
  0xcf   : > { %p1881_p10 = scmp.ne.s32.totalorder %s371_s9, %s1880_s28  ;;  %p1888_p4 = scmp.lt.s32.totalorder %s371_s9, %s371_s9 }
  0xd0   : > { %p1889_p3 = scmp.lt.s32.totalorder %s1887_s22, %s1880_s28 }
  0xd1   : > { %p1883_p0 = pnand %p1881_p10, %p2643_p6 }
  0xd2   : > { %p1890_p12 = por %p1889_p3, %p1888_p4 }
  0xd3   : > { %p1884_p5 = pneg %p1883_p0 }
  0xd5   : > { %p1891_p13 = pnand %p1890_p12, %p1884_p5 }
  0xd7   : > { %1894 = shalt.err (!%p1891_p13)
}
  0xd8   : > { %1566 = dma.hbm_to_vmem [thread:$0]  (!%p2644_p2), %s2593_s8, 16, %s371_s9, [#allocation15]  }
  0xd9   : > { %s2392_s30 = scalar_lea.hbm %s2585_s0, %s2283_s20  ;;  %s385_s25 = scalar_lea.vmem [#allocation2], %s2280_s27 }
  0xda   : > { %s396_s21 = sshll.u32 %s385_s25, 4  ;;  %s2401_s24 = scalar_lea.hbm %s2587_s2, %s2283_s20  ;;  %s2395_s21 = int_to_ptr.vmem [resolvable:$true] %s396_s21 }
  0xdb   : > { %s2645_s5 = sand.u32 1, %s2041_s11   ;;  %s1895_s1 = scalar_lea.hbm %s2392_s30, 128 }
  0xdc   : > { %s382_s9 = scalar_lea.sflag [#allocation3], %s2645_s5  ;;  %p1896_p6 = scmp.ne.s32.totalorder %s2392_s30, %s1895_s1 }
  0xdd   : > { %p2646_p2 = scmp.ne.s32.totalorder %s2642_s17, 0  ;;  %s1900_s7 = scalar_lea.hbm %s2585_s0, 256 }
  0xde   : > { %p1901_p11 = scmp.lt.u32.totalorder %s2392_s30, %s2585_s0  ;;  %p1902_p1 = scmp.lt.u32.totalorder %s1900_s7, %s1895_s1 }
  0xdf   : > { %p1898_p9 = pnand %p1896_p6, %p2646_p2  ;;  %p1904_p10 = scmp.lt.u32.totalorder %s1895_s1, %s2392_s30 }
  0xe0   : > { %p1903_p7 = por %p1902_p1, %p1901_p11 }
  0xe1   : > { %p1899_p8 = pneg %p1898_p9 }
  0xe2   : > { %p1905_p0 = por %p1904_p10, %p1903_p7 }
  0xe4   : > { %p1906_p5 = pnand %p1905_p0, %p1899_p8 }
  0xe6   : > { %1909 = shalt.err (!%p1906_p5)
}
  0xe7   : > { %s1910_s20 = scalar_lea.vmem %s2395_s21, 128  ;;  %s2064_s19 = smov [#allocation2]  }
  0xe8   : > { %p1911_p4 = scmp.ne.s32.totalorder %s2395_s21, %s1910_s20  ;;  %s1915_s25 = sshll.u32 %s2064_s19, 4  ;;  %s1916_s25 = int_to_ptr.vmem [resolvable:$false] %s1915_s25 }
  0xe9   : > { %s1917_s3 = scalar_lea.vmem %s1916_s25, 256  ;;  %p1918_p13 = scmp.lt.s32.totalorder %s2395_s21, %s1916_s25 }
  0xea   : > { %p1913_p3 = pnand %p1911_p4, %p2646_p2  ;;  %p1919_p6 = scmp.lt.s32.totalorder %s1917_s3, %s1910_s20 }
  0xec   : > { %p1914_p12 = pneg %p1913_p3  ;;  %p1920_p9 = por %p1919_p6, %p1918_p13 }
  0xee   : > { %p1921_p11 = pnand %p1920_p9, %p1914_p12 }
  0xf0   : > { %1924 = shalt.err (!%p1921_p11)
}
  0xf1   : > { %p2647_p8 = scmp.ne.s32.totalorder %s2640_s26, 0  ;;  %s426_s18 = scalar_lea.vmem [#allocation7], %s2280_s27 }
  0xf2   : > { %s437_s5 = sshll.u32 %s426_s18, 4  ;;  %s1925_s1 = scalar_lea.hbm %s2401_s24, 128  ;;  %s438_s5 = int_to_ptr.vmem [resolvable:$true] %s437_s5 }
  0xf3   : > { %1570 = dma.hbm_to_vmem [thread:$0]  (!%p2647_p8), %s2392_s30, 128, %s2395_s21, %s382_s9  }
  0xf4   : > { %p1926_p1 = scmp.ne.s32.totalorder %s2401_s24, %s1925_s1  ;;  %s1930_s7 = scalar_lea.hbm %s2587_s2, 256 }
  0xf5   : > { %p1931_p0 = scmp.lt.u32.totalorder %s2401_s24, %s2587_s2  ;;  %p1932_p5 = scmp.lt.u32.totalorder %s1930_s7, %s1925_s1 }
  0xf6   : > { %p1928_p7 = pnand %p1926_p1, %p2646_p2  ;;  %p1934_p3 = scmp.lt.u32.totalorder %s1925_s1, %s2401_s24 }
  0xf7   : > { %p1933_p4 = por %p1932_p5, %p1931_p0 }
  0xf8   : > { %p1929_p10 = pneg %p1928_p7 }
  0xf9   : > { %p1935_p12 = por %p1934_p3, %p1933_p4 }
  0xfb   : > { %p1936_p13 = pnand %p1935_p12, %p1929_p10 }
  0xfd   : > { %1939 = shalt.err (!%p1936_p13)
}
  0xfe   : > { %s1940_s27 = scalar_lea.vmem %s438_s5, 128  ;;  %s2065_s30 = smov [#allocation7]  }
  0xff   : > { %p1941_p6 = scmp.ne.s32.totalorder %s438_s5, %s1940_s27  ;;  %s1945_s21 = sshll.u32 %s2065_s30, 4  ;;  %s1946_s21 = int_to_ptr.vmem [resolvable:$false] %s1945_s21 }
 0x100   : > { %s1947_s9 = scalar_lea.vmem %s1946_s21, 256  ;;  %p1948_p1 = scmp.lt.s32.totalorder %s438_s5, %s1946_s21 }
 0x101   : > { %p1943_p9 = pnand %p1941_p6, %p2646_p2  ;;  %p1949_p7 = scmp.lt.s32.totalorder %s1947_s9, %s1940_s27 }
 0x103   : > { %p1944_p11 = pneg %p1943_p9  ;;  %p1950_p8 = por %p1949_p7, %p1948_p1 }
 0x105   : > { %p1951_p0 = pnand %p1950_p8, %p1944_p11 }
 0x107   : > { %1954 = shalt.err (!%p1951_p0)
}
 0x108   : > { %p2648_p5 = scmp.ne.s32.totalorder %s2640_s26, 0  ;;  %p2649_p10 = scmp.ne.s32.totalorder %s2625_s16, 0 }
 0x109   : > { %s2448_s17 = sand.u32 (!%p2649_p10), 1, %s2037_s10   ;;  %p2650_p2 = scmp.ne.s32.totalorder (!%p2649_p10), %s2634_s23, 0 }
 0x10a   : > { %1576 = dma.hbm_to_vmem [thread:$0]  (!%p2648_p5), %s2401_s24, 128, %s438_s5, %s2303_s13  }
 0x10b   : > { %446 = sbr.rel (%p2649_p10) target bundleno = 1246 (0x4de), region = 56  ;;  %s1346_s20 = sshll.u32 (!%p2649_p10), %s2448_s17, 3 }
 0x10c   : > { %s449_s19 = scalar_lea.sflag (!%p2649_p10), [#allocation3], %s2448_s17 }
 0x112   : > { %2008 = dma.done.wait (%p2650_p2), %s449_s19, 128  }
 0x113   : > { %2010 = vsyncadd (%p2650_p2), %s449_s19, 4294967168  ;;  %s457_s13 = sand.u32 1, %s2154_s15   ;;  %s461_s16 = scalar_lea.vmem [#allocation5], %s1346_s20 }
 0x114   : > { %s458_s26 = scalar_lea.sflag [#allocation6], %s457_s13 }
 0x115   : > { %2012 = dma.done.wait (%p2650_p2), %s458_s26, 256  }
 0x116   : > { %2014 = vsyncadd (%p2650_p2), %s458_s26, 4294967040  ;;  %p2651_p8 = scmp.eq.s32.totalorder %s2154_s15, 0 }
 0x118   : > { %2016 = dma.done.wait (%p2651_p8), [#allocation9], 32   ;;  %p2652_p4 = pmov %p2651_p8 }
 0x11a   : > { %2018 = vsyncadd (%p2652_p4), [#allocation9], 4294967264  ;;  %p2653_p3 = pmov %p2652_p4 }
 0x11c   : > { %2020 = dma.done.wait (%p2653_p3), [#allocation12], 784   ;;  %p2654_p12 = pmov %p2653_p3 }
 0x11d   : > { %p2655_p13 = pmov %p2653_p3 }
 0x11e   : > { %2022 = vsyncadd (%p2654_p12), [#allocation12], 4294966512 }
 0x11f   : > { %2024 = dma.done.wait (%p2655_p13), [#allocation15], 3088   ;;  %p2656_p6 = pmov %p2653_p3 }
 0x120   : > { %vm550_vm0 = vcmask 261120   ;;  %v548_v0 = vld [vmem:[%s461_s16] sm:$0xff]  ;;  %v2066_v7 = vmov 0.0   ;;  %v1659_v10 = vld [vmem:[#allocation11 + $0x10] sm:$0xff]   ;;  %vm2067_vm1 = vmmov 0   ;;  %v2068_v27 = vmov 0  }
 0x121   : > { %2026 = vsyncadd (%p2656_p6), [#allocation15], 4294964208  ;;  %v554_v1 = vsel %vm550_vm0, %v548_v0, 0.0  ;;  %1440 = vmatprep.subr.bf16.mxu0 %v2066_v7  ;;  %1456 = vmatprep.subr.bf16.mxu1 %v2066_v7  ;;  %v1657_v8 = vld [vmem:[#allocation11] sm:$0xff]   ;;  %v1658_v9 = vld [vmem:[#allocation11 + $0x8] sm:$0xff]   ;;  %v645_v28 = vrot.slane %v2068_v27, 1 }
 0x122   : > { %555 = vadd.xlane.f32.xlu0 %v554_v1  ;;  %1441 = vmatpush3.bf16.msra.mxu0 %v1657_v8  ;;  %v1660_v11 = vld [vmem:[#allocation11 + $0x18] sm:$0xff]   ;;  %v1661_v18 = vld [vmem:[#allocation11 + $0x20] sm:$0xff]   ;;  %v1662_v22 = vld [vmem:[#allocation11 + $0x28] sm:$0xff]   ;;  %vm634_vm2 = vsmask.f32 7424  ;;  %v2069_v32 = vmov 0.0|0.0   ;;  %v611_v1 = vlaneseq }
 0x123   : > { %1442 = vmatprep.subr.bf16.mxu0 %v2066_v7  ;;  %v1356_v16 = vld [vmem:[#allocation8] ss:$0 sm:$0xff]  ;;  %v1357_v19 = vld [vmem:[#allocation10] ss:$0 sm:$0xff]  ;;  %1452 = vmatprep.mubr.msk.bf16.mxu0 %vm2067_vm1, %v2066_v7  ;;  %v653_v33 = vrot.slane %v2069_v32, 1  ;;  %s2070_s15 = smov 32  }
 0x124   : > { %1472 = vmatprep.mubr.msk.bf16.mxu1 %vm2067_vm1, %v2066_v7  ;;  %vm651_vm3 = vcmask 1046528   ;;  %s2071_s23 = smov 64   ;;  %vm659_vm4 = vcmask 523264   ;;  %vm719_vm5 = vcmask 785408   ;;  %v1663_v40 = vld [vmem:[#allocation14] sm:$0xff]   ;;  %v1665_v42 = vld [vmem:[#allocation14 + $0x8] sm:$0xff]  }
 0x125   : > { %v1664_v41 = vld [vmem:[#allocation14 + $0x40] sm:$0xff]   ;;  %1457 = vmatpush3.bf16.msra.mxu1 %v1663_v40  ;;  %v1666_v43 = vld [vmem:[#allocation14 + $0x48] sm:$0xff]   ;;  %v1667_v44 = vld [vmem:[#allocation14 + $0x10] sm:$0xff]   ;;  %vm1117_vm9 = vcmask 1045504   ;;  %s2659_s24 = sld [smem:[#allocation28_spill]]  ;;  %s1403_s25 = sshll.u32 %s2045_s12, 7 }
 0x126   : > { %1443 = vmatpush3.bf16.msra.mxu0 %v1658_v9  ;;  %1458 = vmatprep.subr.bf16.mxu1 %v2066_v7  ;;  %v1668_v45 = vld [vmem:[#allocation14 + $0x50] sm:$0xff]   ;;  %v1669_v46 = vld [vmem:[#allocation14 + $0x18] sm:$0xff]   ;;  %v1671_v48 = vld [vmem:[#allocation14 + $0x20] sm:$0xff]   ;;  %s538_s3 = scalar_lea.vmem [#allocation17], %s1346_s20  ;;  %s2660_s28 = sld [smem:[#allocation35_spill]] }
 0x127   : > { %1444 = vmatprep.subr.bf16.mxu0 %v2066_v7  ;;  %v1670_v47 = vld [vmem:[#allocation14 + $0x58] sm:$0xff]   ;;  %v1672_v49 = vld [vmem:[#allocation14 + $0x60] sm:$0xff]   ;;  %v1673_v50 = vld [vmem:[#allocation14 + $0x28] sm:$0xff]   ;;  %s1147_s18 = sshll.u32 %s538_s3, 4  ;;  %s1133_s7 = scalar_lea.sflag [#allocation4], %s2448_s17  ;;  %s2537_s18 = int_to_ptr.vmem [resolvable:$true] %s1147_s18 }
 0x128   : > { %v1674_v51 = vld [vmem:[#allocation14 + $0x68] sm:$0xff]   ;;  %v1675_v52 = vld [vmem:[#allocation14 + $0x30] sm:$0xff]   ;;  %v1677_v54 = vld [vmem:[#allocation14 + $0x38] sm:$0xff]   ;;  %s1955_s14 = scalar_lea.vmem %s2537_s18, 128  ;;  %s2072_s12 = smov [#allocation17]  }
 0x129   : > { %1459 = vmatpush3.bf16.msra.mxu1 %v1665_v42  ;;  %v1676_v53 = vld [vmem:[#allocation14 + $0x70] sm:$0xff]   ;;  %v1678_v55 = vld [vmem:[#allocation14 + $0x78] sm:$0xff]   ;;  %p1956_p9 = scmp.ne.s32.totalorder %s2537_s18, %s1955_s14  ;;  %s1959_s29 = sshll.u32 %s2072_s12, 4  ;;  %s1960_s29 = int_to_ptr.vmem [resolvable:$false] %s1959_s29 }
 0x12a   : > { %1445 = vmatpush3.bf16.msra.mxu0 %v1659_v10  ;;  %1460 = vmatprep.subr.bf16.mxu1 %v2066_v7  ;;  %v1358_v56 = vld [vmem:[#allocation13] ss:$0 sm:$0xff]  ;;  %s1961_s27 = scalar_lea.vmem %s1960_s29, 256  ;;  %p1962_p0 = scmp.lt.s32.totalorder %s2537_s18, %s1960_s29 }
 0x12b   : > { %1446 = vmatprep.subr.bf16.mxu0 %v2066_v7  ;;  %p2661_p11 = scmp.ne.s32.totalorder %s2659_s24, 0  ;;  %p1963_p5 = scmp.lt.s32.totalorder %s1961_s27, %s1955_s14 }
 0x12c   : > { %s2535_s22 = scalar_lea.hbm %s2660_s28, %s1403_s25 }
 0x12d   : > { %1461 = vmatpush3.bf16.msra.mxu1 %v1667_v44  ;;  %p1957_p1 = pnand %p1956_p9, %p2661_p11  ;;  %p1964_p10 = por %p1963_p5, %p1962_p0 }
 0x12e   : > { %1447 = vmatpush3.bf16.msra.mxu0 %v1660_v11  ;;  %1462 = vmatprep.subr.bf16.mxu1 %v2066_v7 }
 0x12f   : > { %1448 = vmatprep.subr.bf16.mxu0 %v2066_v7  ;;  %p1958_p7 = pneg %p1957_p1 }
 0x131   : > { %1463 = vmatpush3.bf16.msra.mxu1 %v1669_v46  ;;  %p1965_p2 = pnand %p1964_p10, %p1958_p7 }
 0x132   : > { %1449 = vmatpush3.bf16.msra.mxu0 %v1661_v18  ;;  %1464 = vmatprep.subr.bf16.mxu1 %v2066_v7  ;;  %v1680_v18 = vld [vmem:[#allocation14 + $0x88] sm:$0xff]  }
 0x133   : > { %1450 = vmatprep.subr.bf16.mxu0 %v2066_v7 }
 0x135   : > { %1465 = vmatpush3.bf16.msra.mxu1 %v1671_v48 }
 0x136   : > { %1451 = vmatpush3.bf16.msra.mxu0 %v1662_v22  ;;  %1466 = vmatprep.subr.bf16.mxu1 %v2066_v7  ;;  %v1684_v22 = vld [vmem:[#allocation14 + $0xa8] sm:$0xff]  }
 0x137   : > { %1476 = vmatprep.subr.bf16.mxu0 %v2066_v7 }
 0x139   : > { %1467 = vmatpush3.bf16.msra.mxu1 %v1673_v50 }
 0x13a   : > { %1468 = vmatprep.subr.bf16.mxu1 %v2066_v7 }
 0x13d   : > { %1469 = vmatpush3.bf16.msra.mxu1 %v1675_v52 }
 0x13e   : > { %1470 = vmatprep.subr.bf16.mxu1 %v2066_v7 }
 0x141   : > { %1471 = vmatpush3.bf16.msra.mxu1 %v1677_v54 }
 0x142   : > { %1496 = vmatprep.subr.bf16.mxu1 %v2066_v7 }
 0x1af   : > { %v556_v2 = vpop.xlane.xlu0 %555 }
 0x1b0   : > { %v562_v3 = vmul.f32 0.03125, %v556_v2 }
 0x1b2   : > { %v565_v4 = vsub.f32 %v548_v0, %v562_v3 }
 0x1b4   : > { %v568_v5 = vmul.f32 %v565_v4, %v565_v4 }
 0x1b6   : > { %v573_v6 = vsel %vm550_vm0, %v568_v5, 0.0  ;;  %v612_v5 = vshrl.u32 %v611_v1, 7 }
 0x1b7   : > { %574 = vadd.xlane.f32.xlu0 %v573_v6 }
 0x1b8   : > { %v613_v8 = vadd.s32 8, %v612_v5  ;;  %v780_v9 = vadd.s32 4294967295, %v612_v5 }
 0x1ba   : > { %v781_v10 = vadd.s32 4294967295, %v613_v8  ;;  %vm782_vm6 = vcmp.ge.s32.totalorder %v780_v9, 0 }
 0x1bc   : > { %vm785_vm7 = vcmp.lt.s32.totalorder %v781_v10, 8 }
 0x1bd   : > { %vm2509_vm8 = vmpackc.low %vm785_vm7, %vm782_vm6 }
 0x244   : > { %v575_v12 = vpop.xlane.xlu0 %574 }
 0x245   : > { %v580_v13 = vmul.f32 0.03125, %v575_v12 }
 0x247   : > { %v583_v14 = vadd.f32 1e-05, %v580_v13 }
 0x249   : > { %1687 = vrsqrt.f32 %v583_v14 }
 0x253   : > { %v1688_v15 = vpop.eup %1687 }
 0x254   : > { %v589_v17 = vmul.f32 %v1688_v15, %v565_v4 }
 0x256   : > { %v599_v20 = vmul.f32 %v1356_v16, %v589_v17  ;;  %v1679_v16 = vld [vmem:[#allocation14 + $0x80] sm:$0xff]  }
 0x258   : > { %v609_v21 = vadd.f32 %v1357_v19, %v599_v20  ;;  %v1681_v19 = vld [vmem:[#allocation14 + $0x90] sm:$0xff]   ;;  %v1682_v20 = vld [vmem:[#allocation14 + $0x98] sm:$0xff]  }
 0x25a   : > { %v632_v23 = vpack.c.bf16 %v609_v21, %v2066_v7  ;;  %v1683_v21 = vld [vmem:[#allocation14 + $0xa0] sm:$0xff]  }
 0x25c   : > { %v638_v24 = vshll.u32 %v632_v23, 16  ;;  %v636_v25 = vshrl.u32 %v632_v23, 16  ;;  %v652_v31 = vrot.slane %v632_v23, 1 }
 0x25e   : > { %v640_v26 = vrot.slane %v638_v24, 1  ;;  %v654_v34 = vsel %vm651_vm3, %v652_v31, %v653_v33  ;;  %v1686_v24 = vld [vmem:[#allocation14 + $0xb8] sm:$0xff]  }
 0x260   : > { %v641_v29 = vor.u32 %v640_v26, %v636_v25 }
 0x262   : > { %v646_v30 = vsel %vm634_vm2, %v641_v29, %v645_v28 }
 0x263   : > { %647 = vrot.lane.b32.xlu1 %v646_v30, %s2070_s15 }
 0x267   : > { %655 = vrot.lane.b32.xlu1 %v654_v34, %s2071_s23 }
 0x2d5   : > { %v648_v35 = vpop.permute.xlu1 %647 }
 0x2d6   : > { %v658_v36 = vsel %vm550_vm0, %v632_v23, %v648_v35  ;;  %v1685_v23 = vld [vmem:[#allocation14 + $0xb0] sm:$0xff]  }
 0x2d9   : > { %v656_v37 = vpop.permute.xlu1 %655 }
 0x2da   : > { %v661_v38 = vsel %vm659_vm4, %v658_v36, %v656_v37 }
 0x2db   : > { %v682_v39 = vrot.slane %v661_v38, 3 }
 0x2dd   : > { %1453 = vmatmul.mubr.msk.bf16.vlgmr.msra.gmra.mrb[0].mxu0 %vm719_vm5, %v682_v39 }
 0x2de   : > { %1492 = vmatprep.mubr.msk.bf16.mxu0 %vm2067_vm1, %v2066_v7  ;;  %1477 = vmatpush3.bf16.msra.mxu0 %v1664_v41 }
 0x2df   : > { %1478 = vmatprep.subr.bf16.mxu0 %v2066_v7 }
 0x2e2   : > { %1479 = vmatpush3.bf16.msra.mxu0 %v1666_v43  ;;  %v1401_v43 = vld [vmem:[#allocation16] ss:$0 sm:$0xff] }
 0x2e3   : > { %1480 = vmatprep.subr.bf16.mxu0 %v2066_v7 }
 0x2e6   : > { %1481 = vmatpush3.bf16.msra.mxu0 %v1668_v45 }
 0x2e7   : > { %1482 = vmatprep.subr.bf16.mxu0 %v2066_v7 }
 0x2ea   : > { %1483 = vmatpush3.bf16.msra.mxu0 %v1670_v47 }
 0x2eb   : > { %1484 = vmatprep.subr.bf16.mxu0 %v2066_v7 }
 0x2ee   : > { %1485 = vmatpush3.bf16.msra.mxu0 %v1672_v49 }
 0x2ef   : > { %1486 = vmatprep.subr.bf16.mxu0 %v2066_v7 }
 0x2f2   : > { %1487 = vmatpush3.bf16.msra.mxu0 %v1674_v51 }
 0x2f3   : > { %1488 = vmatprep.subr.bf16.mxu0 %v2066_v7 }
 0x2f6   : > { %1489 = vmatpush3.bf16.msra.mxu0 %v1676_v53 }
 0x2f7   : > { %1490 = vmatprep.subr.bf16.mxu0 %v2066_v7 }
 0x2fa   : > { %1491 = vmatpush3.bf16.msra.mxu0 %v1678_v55 }
 0x3b0   : > { %v757_v57 = vpop.f32.mrb[0].mxu0 }
 0x3b1   : > { %v758_v58 = vadd.f32 %v1358_v56, %v757_v57  ;;  %v1454_v59 = vpop.f32.mrb[1].mxu0 }
 0x3b2   : > { %v760_v60 = vpop.f32.mrb[2].mxu0 }
 0x3b3   : > { %v1366_v61 = vmul.f32 -1.442695, %v758_v58  ;;  %v761_v62 = vadd.f32 %v1358_v56, %v760_v60  ;;  %v1455_v63 = vpop.f32.mrb[3].mxu0 }
 0x3b5   : > { %1689 = vpow2.f32 %v1366_v61  ;;  %v1367_v0 = vmul.f32 -1.442695, %v761_v62 }
 0x3b7   : > { %1691 = vpow2.f32 %v1367_v0 }
 0x3bf   : > { %v1690_v2 = vpop.eup %1689 }
 0x3c0   : > { %v770_v3 = vadd.f32 1.0, %v1690_v2 }
 0x3c1   : > { %v1692_v4 = vpop.eup %1691 }
 0x3c2   : > { %1693 = vrcp.f32 %v770_v3  ;;  %v771_v6 = vadd.f32 1.0, %v1692_v4 }
 0x3c4   : > { %1695 = vrcp.f32 %v771_v6 }
 0x3cc   : > { %v1694_v11 = vpop.eup %1693 }
 0x3cd   : > { %v776_v13 = vmul.f32 %v1694_v11, %v758_v58 }
 0x3ce   : > { %v1696_v12 = vpop.eup %1695 }
 0x3cf   : > { %v777_v14 = vmul.f32 %v1696_v12, %v761_v62 }
 0x3d1   : > { %v1377_v17 = vpack.c.bf16 %v777_v14, %v776_v13 }
 0x3d3   : > { %1473 = vmatmul.mubr.msk.bf16.vlgmr.msra.gmra.mrb[0].mxu1 %vm2509_vm8, %v1377_v17  ;;  %1493 = vmatmul.mubr.msk.bf16.vlgmr.msra.gmra.mrb[4].mxu0 %vm2509_vm8, %v1377_v17 }
 0x3d4   : > { %1497 = vmatpush3.bf16.msra.mxu1 %v1679_v16  ;;  %1512 = vmatprep.mubr.msk.bf16.mxu1 %vm2067_vm1, %v2066_v7 }
 0x3d5   : > { %1498 = vmatprep.subr.bf16.mxu1 %v2066_v7 }
 0x3d8   : > { %1499 = vmatpush3.bf16.msra.mxu1 %v1680_v18 }
 0x3d9   : > { %1500 = vmatprep.subr.bf16.mxu1 %v2066_v7 }
 0x3dc   : > { %1501 = vmatpush3.bf16.msra.mxu1 %v1681_v19 }
 0x3dd   : > { %1502 = vmatprep.subr.bf16.mxu1 %v2066_v7 }
 0x3e0   : > { %1503 = vmatpush3.bf16.msra.mxu1 %v1682_v20 }
 0x3e1   : > { %1504 = vmatprep.subr.bf16.mxu1 %v2066_v7 }
 0x3e4   : > { %1505 = vmatpush3.bf16.msra.mxu1 %v1683_v21 }
 0x3e5   : > { %1506 = vmatprep.subr.bf16.mxu1 %v2066_v7 }
 0x3e8   : > { %1507 = vmatpush3.bf16.msra.mxu1 %v1684_v22 }
 0x3e9   : > { %1508 = vmatprep.subr.bf16.mxu1 %v2066_v7 }
 0x3ec   : > { %1509 = vmatpush3.bf16.msra.mxu1 %v1685_v23 }
 0x3ed   : > { %1510 = vmatprep.subr.bf16.mxu1 %v2066_v7 }
 0x3f0   : > { %1511 = vmatpush3.bf16.msra.mxu1 %v1686_v24 }
 0x3f3   : > { %1513 = vmatmul.mubr.msk.bf16.vlgmr.msra.gmra.mrb[4].mxu1 %vm2509_vm8, %v1377_v17 }
 0x4a6   : > { %v889_v25 = vpop.f32.mrb[0].mxu1  ;;  %v994_v26 = vpop.f32.mrb[4].mxu0 }
 0x4a7   : > { %v1474_v27 = vpop.f32.mrb[1].mxu1  ;;  %v1494_v28 = vpop.f32.mrb[5].mxu0  ;;  %v1110_v31 = vrot.slane %v994_v26, 1 }
 0x4a8   : > { %v892_v29 = vpop.f32.mrb[2].mxu1  ;;  %v997_v30 = vpop.f32.mrb[6].mxu0 }
 0x4a9   : > { %v1111_v32 = vrot.slane %v997_v30, 1  ;;  %v1475_v33 = vpop.f32.mrb[3].mxu1  ;;  %v1495_v34 = vpop.f32.mrb[7].mxu0 }
 0x4ab   : > { %v1112_v35 = vsel %vm651_vm3, %v1110_v31, %v1111_v32 }
 0x4ac   : > { %v1114_v36 = vadd.f32 %v1112_v35, %v889_v25 }
 0x4c6   : > { %v1100_v7 = vpop.f32.mrb[4].mxu1 }
 0x4c7   : > { %v1514_v37 = vpop.f32.mrb[5].mxu1  ;;  %v1118_v39 = vrot.slane %v1100_v7, 2 }
 0x4c8   : > { %v1103_v38 = vpop.f32.mrb[6].mxu1 }
 0x4c9   : > { %v1119_v40 = vrot.slane %v1103_v38, 2  ;;  %v1515_v41 = vpop.f32.mrb[7].mxu1 }
 0x4cb   : > { %v1120_v42 = vsel %vm1117_vm9, %v1118_v39, %v1119_v40 }
 0x4cc   : > { %v1122_v44 = vadd.f32 %v1120_v42, %v1114_v36 }
 0x4ce   : > { %v1130_v45 = vadd.f32 %v1401_v43, %v1122_v44 }
 0x4d0   : > { %1131 = vst.msk [vmem:[%s538_s3] sm:$0xff] %vm550_vm0, %v1130_v45 }
 0x4d1   : > { %1968 = shalt.err (!%p1965_p2)
}
 0x4d2   : > { %s1969_s30 = scalar_lea.hbm %s2535_s22, 128  ;;  %s1973_s17 = scalar_lea.hbm %s2660_s28, 256 }
 0x4d3   : > { %p1970_p8 = scmp.ne.s32.totalorder %s2535_s22, %s1969_s30  ;;  %p1974_p12 = scmp.lt.u32.totalorder %s2535_s22, %s2660_s28 }
 0x4d4   : > { %p1975_p13 = scmp.lt.u32.totalorder %s1973_s17, %s1969_s30  ;;  %p1977_p9 = scmp.lt.u32.totalorder %s1969_s30, %s2535_s22 }
 0x4d5   : > { %p1971_p4 = pnand %p1970_p8, %p2661_p11 }
 0x4d6   : > { %p1976_p6 = por %p1975_p13, %p1974_p12 }
 0x4d7   : > { %p1972_p3 = pneg %p1971_p4 }
 0x4d8   : > { %p1978_p1 = por %p1977_p9, %p1976_p6 }
 0x4da   : > { %p1979_p7 = pnand %p1978_p1, %p1972_p3 }
 0x4dc   : > { %1982 = shalt.err (!%p1979_p7)
}
 0x4dd   : > { %1546 = dma.vmem_to_hbm [thread:$0]  (%p2661_p11), %s2537_s18, 128, %s2535_s22, %s1133_s7  }
 0x4de PF: > { %s2662_s13 = sld [smem:[#allocation24_spill]]  ;;  %s2663_s26 = sld [smem:[#allocation30_spill]] }
 0x4df   : > { %s2664_s16 = sld [smem:[#allocation26_spill]] }
 0x4e4   : > { %s1159_s15 = sand.u32 1, %s2662_s13   ;;  %p2665_p0 = scmp.ne.s32.totalorder %s2663_s26, 0 }
 0x4e5   : > { %p2666_p5 = scmp.ge.s32.totalorder %s2664_s16, 2  ;;  %s1160_s23 = scalar_lea.sflag [#allocation4], %s1159_s15 }
 0x4e7   : > { %p1578_p10 = pnand %p2666_p5, %p2665_p0 }
 0x4e9   : > { %2028 = dma.done.wait (!%p1578_p10), %s1160_s23, 128  }
 0x4ea   : > { %2030 = vsyncadd (!%p1578_p10), %s1160_s23, 4294967168  ;;  %s31_s14 = sadd.s32 1, %s2664_s16   ;;  %s2667_s24 = sld [smem:[#allocation29_spill]] }
 0x4eb   : > { %p28_p2 = scmp.ge.s32.totalorder %s31_s14, 4   ;;  %s2668_s12 = sld [smem:[#allocation25_spill]] }
 0x4ec   : > { %s2669_s13 = sld [smem:[#allocation27_spill]]  ;;  %s2670_s30 = smov %s2037_s10 }
 0x4ed   : > { %s2671_s10 = smov %s2041_s11  ;;  %30 = sbr.rel (!%p28_p2) target bundleno = 17 (0x11), region = 151 }
 0x4f0   : > { %s2672_s11 = smov %s2667_s24 }
 0x4f4   :  { %1165 = vsyncpa [#allocation3], 1 }
 0x4f5   :  { %1167 = vsyncpa [#allocation3 + $0x1], 1 }
 0x4f6   :  { %1168 = vsyncpa [#allocation6], 1 }
 0x4f7   :  { %1170 = vsyncpa [#allocation6 + $0x1], 1 }
 0x4f8   :  { %1171 = vsyncpa [#allocation9], 1 }
 0x4f9   :  { %1172 = vsyncpa [#allocation12], 1 }
 0x4fa   :  { %1173 = vsyncpa [#allocation15], 1 }
 0x4fb   :  { %1174 = vsyncpa [#allocation4], 1 }
 0x4fc   :  { %1176 = vsyncpa [#allocation4 + $0x1], 1 }

</bundles_post_ra>
